<compile_context>
chip_gen: v5e
topology: v5e:2x2
jax: 0.10.0
libtpu: 0.0.40
codegen_flags: <defaults>
</compile_context>

<pallas_src>
import functools

import jax
import jax.numpy as jnp
from jax.experimental import pallas as pl
from jax.experimental.pallas import tpu as pltpu


# ct * ht * W element budget per subband tile.  f32: input tile ~2 MiB +
# output tile ~2 MiB, x2 double-buffering ~= 8 MiB -> inside every
# generation's scoped-VMEM default with headroom for relayout scratch.
_TILE_ELEMS = 128 * 1024


def _divisors(n):
    return [d for d in range(1, n + 1) if n % d == 0]


def _pick_tiles(C, H, W):
    """Pick (channel_tile, row_tile) honoring the (8, 128) block constraint."""
    if H % 8 == 0:
        h_cands = [d for d in _divisors(H) if d % 8 == 0]  # sublane multiples
    else:
        h_cands = [H]                                      # must equal full dim
    h_cap = max(1, _TILE_ELEMS // max(W, 1))
    fit = [d for d in h_cands if d <= h_cap]
    ht = max(fit) if fit else min(h_cands)
    c_cap = max(1, _TILE_ELEMS // (ht * W))
    ct = max(d for d in _divisors(C) if d <= c_cap)
    return ct, ht


def _butterfly(x_ref):
    """Load the 4 subbands of the current tile and return the 4 combos (f32)."""
    x1 = x_ref[0, 0].astype(jnp.float32) * 0.5
    x2 = x_ref[0, 1].astype(jnp.float32) * 0.5
    x3 = x_ref[0, 2].astype(jnp.float32) * 0.5
    x4 = x_ref[0, 3].astype(jnp.float32) * 0.5
    s14 = x1 + x4
    d14 = x1 - x4
    s23 = x2 + x3
    d23 = x2 - x3
    o00 = s14 - s23   # -> h[..., 0::2, 0::2]
    o01 = d14 + d23   # -> h[..., 0::2, 1::2]
    o10 = d14 - d23   # -> h[..., 1::2, 0::2]
    o11 = s14 + s23   # -> h[..., 1::2, 1::2]
    return o00, o01, o10, o11


def _iwt_kernel_fused(x_ref, o_ref):
    # x_ref: (1, 4, ct, ht, W)   o_ref: (1, ct, 2*ht, 2*W)
    o00, o01, o10, o11 = _butterfly(x_ref)
    ct, ht, w = o00.shape
    # Column (s) interleave -> lane-dense rows of width 2W (XLU shuffle).
    even_rows = jnp.stack([o00, o01], axis=-1).reshape(ct, ht, 2 * w)
    odd_rows = jnp.stack([o10, o11], axis=-1).reshape(ct, ht, 2 * w)
    # Row (r) interleave -> (ct, 2*ht, 2*W); sublane-level shuffle, lanes kept.
    tile = jnp.stack([even_rows, odd_rows], axis=-2).reshape(ct, 2 * ht, 2 * w)
    o_ref[0] = tile.astype(o_ref.dtype)


def _iwt_kernel_split(x_ref, o_ref):
    # Fallback: dense stores only (always lowers); interleave done by XLA glue.
    # x_ref: (1, 4, ct, ht, W)   o_ref: (4, 1, ct, ht, W), leading index = 2*r + s
    o00, o01, o10, o11 = _butterfly(x_ref)
    o_ref[0, 0] = o00.astype(o_ref.dtype)
    o_ref[1, 0] = o01.astype(o_ref.dtype)
    o_ref[2, 0] = o10.astype(o_ref.dtype)
    o_ref[3, 0] = o11.astype(o_ref.dtype)


@functools.lru_cache(maxsize=None)
def _get_impl(shape, dtype_name):
    """Build (and AOT-probe) the jitted implementation for one input signature."""
    B, C4, H, W = shape
    C = C4 // 4
    dtype = jnp.dtype(dtype_name)
    out_dtype = jnp.float32  # torch's iwt_init always returns float32

    ct, ht = _pick_tiles(C, H, W)
    grid = (B, C // ct, H // ht)
    in_spec = pl.BlockSpec((1, 4, ct, ht, W), lambda b, c, h: (b, 0, c, h, 0))
    params = pltpu.CompilerParams(
        dimension_semantics=("parallel", "parallel", "parallel"))

    def fused(x):
        xr = x.reshape(B, 4, C, H, W)   # metadata-only (subband, C) factoring
        return pl.pallas_call(
            _iwt_kernel_fused,
            out_shape=jax.ShapeDtypeStruct((B, C, 2 * H, 2 * W), out_dtype),
            grid=grid,
            in_specs=[in_spec],
            out_specs=pl.BlockSpec((1, ct, 2 * ht, 2 * W),
                                   lambda b, c, h: (b, c, h, 0)),
            compiler_params=params,
        )(xr)

    def split(x):
        xr = x.reshape(B, 4, C, H, W)
        o4 = pl.pallas_call(
            _iwt_kernel_split,
            out_shape=jax.ShapeDtypeStruct((4, B, C, H, W), out_dtype),
            grid=grid,
            in_specs=[in_spec],
            out_specs=pl.BlockSpec((4, 1, ct, ht, W),
                                   lambda b, c, h: (0, b, c, h, 0)),
            compiler_params=params,
        )(xr)
        h4 = o4.reshape(2, 2, B, C, H, W)            # (r, s, b, c, i, j)
        return h4.transpose(2, 3, 4, 0, 5, 1).reshape(B, C, 2 * H, 2 * W)

    fused_jit = jax.jit(fused)
    try:
        # Abstract AOT probe: no data, no host sync, safe under outer jit.
        fused_jit.lower(jax.ShapeDtypeStruct(shape, dtype)).compile()
        return fused_jit
    except Exception:
        # Mosaic on this version cannot lower the on-chip interleave; fall
        # back to the dense-subband kernel + XLA-side interleave.
        return jax.jit(split)


def iwt(x):
    """Pallas IWT: (B, 4*C, H, W) -> (B, C, 2*H, 2*W) float32 (as torch iwt_init)."""
    assert x.ndim == 4 and x.shape[1] % 4 == 0, "channel dim must be divisible by 4"
    return _get_impl(tuple(x.shape), jnp.dtype(x.dtype).name)(x)


def _iwt_ref(x):
    """Pure-JAX reference mirroring the PyTorch iwt_init."""
    B, C4, H, W = x.shape
    C = C4 // 4
    xf = x.astype(jnp.float32)
    x1 = xf[:, 0:C] / 2
    x2 = xf[:, C:2 * C] / 2
    x3 = xf[:, 2 * C:3 * C] / 2
    x4 = xf[:, 3 * C:4 * C] / 2
    h = jnp.zeros((B, C, 2 * H, 2 * W), jnp.float32)
    h = h.at[:, :, 0::2, 0::2].set(x1 - x2 - x3 + x4)
    h = h.at[:, :, 1::2, 0::2].set(x1 - x2 + x3 - x4)
    h = h.at[:, :, 0::2, 1::2].set(x1 + x2 - x3 - x4)
    h = h.at[:, :, 1::2, 1::2].set(x1 + x2 + x3 + x4)
    return h


if __name__ == "__main__":
    key = jax.random.PRNGKey(0)
    k1, k2 = jax.random.split(key)

    # Shape consistent with the module: (B, 4*C, H, W) = (2, 4, 16, 16).
    x = jax.random.normal(k1, (2, 4, 16, 16), dtype=jnp.float32)
    y = iwt(x)
    jax.block_until_ready(y)
    assert y.shape == (2, 1, 32, 32)
    assert y.dtype == jnp.float32
    assert jnp.allclose(y, _iwt_ref(x), atol=1e-5, rtol=1e-6), "mismatch vs reference"

    # Second case with a lane-dense width (W = 128) and C > 1.
    x2 = jax.random.normal(k2, (2, 8, 16, 128), dtype=jnp.float32)
    y2 = iwt(x2)
    jax.block_until_ready(y2)
    assert y2.shape == (2, 2, 32, 256)
    assert jnp.allclose(y2, _iwt_ref(x2), atol=1e-5, rtol=1e-6), "mismatch vs reference"

    print("KERNEL_OK")
</pallas_src>

<mosaic_0001>
module attributes {stable_mosaic.version = 11 : i64} {
  func.func @_iwt_kernel_split(%arg0: i32, %arg1: i32, %arg2: i32, %arg3: memref<1x4x1x16x16xf32, #tpu.memory_space<vmem>>, %arg4: memref<4x1x1x16x16xf32, #tpu.memory_space<vmem>>) attributes {dimension_semantics = [#tpu.dimension_semantics<parallel>, #tpu.dimension_semantics<parallel>, #tpu.dimension_semantics<parallel>], iteration_bounds = array<i64: 2, 1, 1>, scalar_prefetch = 0 : i64, scratch_operands = 0 : i64, tpu.core_type = #tpu.core_type<tc>, window_params = [{transform_indices = @transform_0, window_bounds = array<i64: 1, 4, 1, 16, 16>}, {transform_indices = @transform_1, window_bounds = array<i64: 4, 1, 1, 16, 16>}]} {
    %c0 = arith.constant 0 : index
    %c0_0 = arith.constant 0 : index
    %c0_1 = arith.constant 0 : index
    %c0_2 = arith.constant 0 : index
    %c0_3 = arith.constant 0 : index
    %0 = vector.load %arg3[%c0, %c0_0, %c0_1, %c0_2, %c0_3] : memref<1x4x1x16x16xf32, #tpu.memory_space<vmem>>, vector<1x1x1x16x16xf32>
    %1 = vector.shape_cast %0 : vector<1x1x1x16x16xf32> to vector<1x16x16xf32>
    %cst = arith.constant 5.000000e-01 : f32
    %2 = vector.broadcast %cst : f32 to vector<1x16x16xf32>
    %3 = arith.mulf %1, %2 : vector<1x16x16xf32>
    %c0_4 = arith.constant 0 : index
    %c1 = arith.constant 1 : index
    %c0_5 = arith.constant 0 : index
    %c0_6 = arith.constant 0 : index
    %c0_7 = arith.constant 0 : index
    %4 = vector.load %arg3[%c0_4, %c1, %c0_5, %c0_6, %c0_7] : memref<1x4x1x16x16xf32, #tpu.memory_space<vmem>>, vector<1x1x1x16x16xf32>
    %5 = vector.shape_cast %4 : vector<1x1x1x16x16xf32> to vector<1x16x16xf32>
    %cst_8 = arith.constant 5.000000e-01 : f32
    %6 = vector.broadcast %cst_8 : f32 to vector<1x16x16xf32>
    %7 = arith.mulf %5, %6 : vector<1x16x16xf32>
    %c0_9 = arith.constant 0 : index
    %c2 = arith.constant 2 : index
    %c0_10 = arith.constant 0 : index
    %c0_11 = arith.constant 0 : index
    %c0_12 = arith.constant 0 : index
    %8 = vector.load %arg3[%c0_9, %c2, %c0_10, %c0_11, %c0_12] : memref<1x4x1x16x16xf32, #tpu.memory_space<vmem>>, vector<1x1x1x16x16xf32>
    %9 = vector.shape_cast %8 : vector<1x1x1x16x16xf32> to vector<1x16x16xf32>
    %cst_13 = arith.constant 5.000000e-01 : f32
    %10 = vector.broadcast %cst_13 : f32 to vector<1x16x16xf32>
    %11 = arith.mulf %9, %10 : vector<1x16x16xf32>
    %c0_14 = arith.constant 0 : index
    %c3 = arith.constant 3 : index
    %c0_15 = arith.constant 0 : index
    %c0_16 = arith.constant 0 : index
    %c0_17 = arith.constant 0 : index
    %12 = vector.load %arg3[%c0_14, %c3, %c0_15, %c0_16, %c0_17] : memref<1x4x1x16x16xf32, #tpu.memory_space<vmem>>, vector<1x1x1x16x16xf32>
    %13 = vector.shape_cast %12 : vector<1x1x1x16x16xf32> to vector<1x16x16xf32>
    %cst_18 = arith.constant 5.000000e-01 : f32
    %14 = vector.broadcast %cst_18 : f32 to vector<1x16x16xf32>
    %15 = arith.mulf %13, %14 : vector<1x16x16xf32>
    %16 = arith.addf %3, %15 : vector<1x16x16xf32>
    %17 = arith.subf %3, %15 : vector<1x16x16xf32>
    %18 = arith.addf %7, %11 : vector<1x16x16xf32>
    %19 = arith.subf %7, %11 : vector<1x16x16xf32>
    %20 = arith.subf %16, %18 : vector<1x16x16xf32>
    %21 = arith.addf %17, %19 : vector<1x16x16xf32>
    %22 = arith.subf %17, %19 : vector<1x16x16xf32>
    %23 = arith.addf %16, %18 : vector<1x16x16xf32>
    %c0_19 = arith.constant 0 : index
    %c0_20 = arith.constant 0 : index
    %c0_21 = arith.constant 0 : index
    %c0_22 = arith.constant 0 : index
    %c0_23 = arith.constant 0 : index
    %24 = vector.load %arg4[%c0_19, %c0_20, %c0_21, %c0_22, %c0_23] : memref<4x1x1x16x16xf32, #tpu.memory_space<vmem>>, vector<1x1x1x16x16xf32>
    %25 = vector.shape_cast %24 : vector<1x1x1x16x16xf32> to vector<1x16x16xf32>
    %26 = vector.shape_cast %20 : vector<1x16x16xf32> to vector<1x1x1x16x16xf32>
    tpu.vector_store %arg4[%c0_19, %c0_20, %c0_21, %c0_22, %c0_23], %26 {strides = array<i32>} : memref<4x1x1x16x16xf32, #tpu.memory_space<vmem>>, vector<1x1x1x16x16xf32>,
    %c1_24 = arith.constant 1 : index
    %c0_25 = arith.constant 0 : index
    %c0_26 = arith.constant 0 : index
    %c0_27 = arith.constant 0 : index
    %c0_28 = arith.constant 0 : index
    %27 = vector.load %arg4[%c1_24, %c0_25, %c0_26, %c0_27, %c0_28] : memref<4x1x1x16x16xf32, #tpu.memory_space<vmem>>, vector<1x1x1x16x16xf32>
    %28 = vector.shape_cast %27 : vector<1x1x1x16x16xf32> to vector<1x16x16xf32>
    %29 = vector.shape_cast %21 : vector<1x16x16xf32> to vector<1x1x1x16x16xf32>
    tpu.vector_store %arg4[%c1_24, %c0_25, %c0_26, %c0_27, %c0_28], %29 {strides = array<i32>} : memref<4x1x1x16x16xf32, #tpu.memory_space<vmem>>, vector<1x1x1x16x16xf32>,
    %c2_29 = arith.constant 2 : index
    %c0_30 = arith.constant 0 : index
    %c0_31 = arith.constant 0 : index
    %c0_32 = arith.constant 0 : index
    %c0_33 = arith.constant 0 : index
    %30 = vector.load %arg4[%c2_29, %c0_30, %c0_31, %c0_32, %c0_33] : memref<4x1x1x16x16xf32, #tpu.memory_space<vmem>>, vector<1x1x1x16x16xf32>
    %31 = vector.shape_cast %30 : vector<1x1x1x16x16xf32> to vector<1x16x16xf32>
    %32 = vector.shape_cast %22 : vector<1x16x16xf32> to vector<1x1x1x16x16xf32>
    tpu.vector_store %arg4[%c2_29, %c0_30, %c0_31, %c0_32, %c0_33], %32 {strides = array<i32>} : memref<4x1x1x16x16xf32, #tpu.memory_space<vmem>>, vector<1x1x1x16x16xf32>,
    %c3_34 = arith.constant 3 : index
    %c0_35 = arith.constant 0 : index
    %c0_36 = arith.constant 0 : index
    %c0_37 = arith.constant 0 : index
    %c0_38 = arith.constant 0 : index
    %33 = vector.load %arg4[%c3_34, %c0_35, %c0_36, %c0_37, %c0_38] : memref<4x1x1x16x16xf32, #tpu.memory_space<vmem>>, vector<1x1x1x16x16xf32>
    %34 = vector.shape_cast %33 : vector<1x1x1x16x16xf32> to vector<1x16x16xf32>
    %35 = vector.shape_cast %23 : vector<1x16x16xf32> to vector<1x1x1x16x16xf32>
    tpu.vector_store %arg4[%c3_34, %c0_35, %c0_36, %c0_37, %c0_38], %35 {strides = array<i32>} : memref<4x1x1x16x16xf32, #tpu.memory_space<vmem>>, vector<1x1x1x16x16xf32>,
    return
  }
  func.func @transform_0(%arg0: i32, %arg1: i32, %arg2: i32) -> (i32, i32, i32, i32, i32) {
    %c0_i32 = arith.constant 0 : i32
    %c0_i32_0 = arith.constant 0 : i32
    %c0_i32_1 = arith.constant 0 : i32
    return %arg0, %c0_i32, %arg1, %arg2, %c0_i32_0 : i32, i32, i32, i32, i32
  }
  func.func @transform_1(%arg0: i32, %arg1: i32, %arg2: i32) -> (i32, i32, i32, i32, i32) {
    %c0_i32 = arith.constant 0 : i32
    %c0_i32_0 = arith.constant 0 : i32
    %c0_i32_1 = arith.constant 0 : i32
    return %c0_i32, %arg0, %arg1, %arg2, %c0_i32_0 : i32, i32, i32, i32, i32
  }
}

</mosaic_0001>

<bundles_post_ra>
// kernel: split.1
= control target key start
LH: loop header
LB: loop body
LE: loop exit
PB: predicated region body
PF: predicated region fallthrough
CT: control target
= control target key end

     0   :  { %6 = vsyncpa [#allocation3], 0  ;;  %s656_s0 = inlined_call_operand.hbm [shape: f32[2,4,1,16,16], index: 0, kind: input, shape index: {}]   ;;  %s657_s1 = inlined_call_operand.vmem [shape: f32[4,2,1,16,16], index: 1, kind: output, shape index: {}]  }
   0x1   :  { %8 = vsyncpa [#allocation3 + $0x1], 0  ;;  %s551_s6 = smov 0   ;;  %s553_s7 = smov 0  }
   0x2   :  { %s555_s8 = smov 0   ;;  %s557_s9 = smov 0  }
   0x3   :  { %s559_s10 = smov 0   ;;  %s561_s11 = smov 0  }
   0x4 LB: > { %s371_s12 = sadd.s32 4294967295, %s537_s11   ;;  %s33_s13 = sadd.s32 1, %s533_s10  ;;  %s537_s11 = sphi %s561_s11, %s14_s11   ;;  %s533_s10 = sphi %s559_s10, %s665_s10   ;;  %s529_s9 = sphi %s557_s9, %s664_s9   ;;  %s525_s8 = sphi %s555_s8, %s663_s8   ;;  %s521_s7 = sphi %s553_s7, %s662_s7   ;;  %s517_s6 = sphi %s551_s6, %s661_s6  }
   0x5   : > { %p35_p0 = scmp.ge.s32.totalorder %s33_s13, 2  ;;  %s44_s14 = sadd.s32 1, %s525_s8 }
   0x6   : > { %p51_p1 = scmp.ne.s32.totalorder %s525_s8, %s521_s7  ;;  %p52_p2 = scmp.eq.s32.totalorder %s537_s11, 0 }
   0x7   : > { %s667_s13 = smov (%p35_p0, %s33_s13), 0  ;;  %p57_p4 = scmp.ne.s32.totalorder %s521_s7, %s517_s6 }
   0x8   : > { %p587_p3 = por %p52_p2, %p51_p1  ;;  %s37_s16 = ssub.s32 %s533_s10, %s667_s13 }
   0x9   : > { %p58_p5 = scmp.eq.s32.totalorder %s371_s12, 0  ;;  %p42_p6 = scmp.eq.s32.totalorder %s37_s16, 0 }
   0xa   : > { %p85_p7 = scmp.eq.s32.totalorder %s371_s12, 1  ;;  %p406_p10 = scmp.lt.s32.totalorder %s537_s11, 2 }
   0xb   : > { %p594_p8 = por %p58_p5, %p57_p4  ;;  %s111_s20 = sand.u32 1, %s525_s8  }
   0xc   : > { %s599_s18 = scalar_select %p42_p6, %s525_s8, %s44_s14  }
   0xd   : > { %p601_p9 = por %p85_p7, %p51_p1  ;;  %s398_s21 = sshll.u32 %s533_s10, 6 }
   0xe   : > { %s375_s22 = sshll.u32 %s111_s20, 6  ;;  %s124_s25 = scalar_lea.hbm %s656_s0, %s398_s21 }
   0xf   : > { %s125_s26 = sshll.u32 %s124_s25, 4  ;;  %s115_s27 = scalar_lea.vmem [#allocation2], %s375_s22  ;;  %s126_s26 = int_to_ptr.hbm [resolvable:$true] %s125_s26 }
  0x10   : > { %s127_s28 = sshll.u32 %s115_s27, 4  ;;  %p403_p11 = pnand %p406_p10, %p587_p3  ;;  %s128_s28 = int_to_ptr.vmem [resolvable:$true] %s127_s28 }
  0x11   : > { %p378_p12 = scmp.ge.s32.totalorder %s537_s11, 1  ;;  %p135_p13 = scmp.lt.s32.totalorder %s537_s11, 3 }
  0x12   : > { %s112_s29 = scalar_lea.sflag [#allocation3], %s111_s20  ;;  %s539_s30 = smov 128  }
  0x13   : > { %s540_s2 = smov 8   ;;  %p136_p0 = pnand %p378_p12, %p135_p13 }
  0x14   : > { %405 = dma.hbm_to_vmem [thread:$0]  (!%p403_p11), %s126_s26, 1024, %s128_s28, %s112_s29, %s539_s30, %s539_s30, %s540_s2  }
  0x15   : > { %139 = sbr.rel (%p136_p0) target bundleno = 51 (0x33), region = 24  ;;  %s141_s3 = sand.u32 (!%p136_p0), 1, %s521_s7  }
  0x16   : > { %s616_s4 = sshll.u32 (!%p136_p0), %s141_s3, 6  ;;  %s142_s5 = scalar_lea.sflag (!%p136_p0), [#allocation3], %s141_s3 }
  0x17   : > { %s145_s6 = scalar_lea.vmem (!%p136_p0), [#allocation2], %s616_s4 }
  0x1a   : > { %512 = dma.done.wait (%p594_p8), %s142_s5, 1024  }
  0x1b   : > { %514 = vsyncadd (%p594_p8), %s142_s5, 4294966272  ;;  %v166_v0 = vld [vmem:[%s145_s6] sm:$0xff]  ;;  %v381_v1 = vld [vmem:[%s145_s6 + $0x10] sm:$0xff]  ;;  %vm201_vm0 = vcmask 130048   ;;  %s163_s12 = scalar_lea.vmem [#allocation4], %s616_s4  ;;  %s399_s14 = sshll.u32 (%p601_p9), %s529_s9, 4 }
  0x1c   : > { %v383_v2 = vld [vmem:[%s145_s6 + $0x20] sm:$0xff]  ;;  %v168_v3 = vmul.f32 0.5, %v166_v0  ;;  %v173_v4 = vmul.f32 0.5, %v381_v1  ;;  %v385_v6 = vld [vmem:[%s145_s6 + $0x30] sm:$0xff]  ;;  %v167_v7 = vld [vmem:[%s145_s6 + $0x8] sm:$0xff]  ;;  %s226_s17 = scalar_lea.vmem (%p601_p9), %s657_s1, %s399_s14 }
  0x1d   : > { %v178_v5 = vmul.f32 0.5, %v383_v2  ;;  %v382_v8 = vld [vmem:[%s145_s6 + $0x18] sm:$0xff]  ;;  %v183_v9 = vmul.f32 0.5, %v385_v6  ;;  %v169_v10 = vmul.f32 0.5, %v167_v7  ;;  %v384_v12 = vld [vmem:[%s145_s6 + $0x28] sm:$0xff] }
  0x1e   : > { %v174_v11 = vmul.f32 0.5, %v382_v8  ;;  %v386_v13 = vld [vmem:[%s145_s6 + $0x38] sm:$0xff]  ;;  %v179_v15 = vmul.f32 0.5, %v384_v12 }
  0x1f   : > { %v189_v14 = vadd.f32 %v178_v5, %v173_v4  ;;  %v184_v16 = vmul.f32 0.5, %v386_v13  ;;  %v191_v17 = vsub.f32 %v173_v4, %v178_v5  ;;  %v185_v18 = vadd.f32 %v183_v9, %v168_v3 }
  0x20   : > { %v187_v19 = vsub.f32 %v168_v3, %v183_v9  ;;  %v190_v21 = vadd.f32 %v179_v15, %v174_v11  ;;  %v192_v23 = vsub.f32 %v174_v11, %v179_v15 }
  0x21   : > { %v186_v20 = vadd.f32 %v184_v16, %v169_v10  ;;  %v188_v22 = vsub.f32 %v169_v10, %v184_v16  ;;  %v193_v24 = vsub.f32 %v185_v18, %v189_v14  ;;  %v199_v30 = vadd.f32 %v189_v14, %v185_v18 }
  0x22   : > { %v195_v25 = vadd.f32 %v191_v17, %v187_v19  ;;  %v197_v28 = vsub.f32 %v187_v19, %v191_v17 }
  0x23   : > { %v194_v26 = vsub.f32 %v186_v20, %v190_v21  ;;  %v196_v27 = vadd.f32 %v192_v23, %v188_v22  ;;  %202 = vst.msk [vmem:[%s163_s12] sm:$0xff] %vm201_vm0, %v193_v24  ;;  %v198_v29 = vsub.f32 %v188_v22, %v192_v23  ;;  %v200_v31 = vadd.f32 %v190_v21, %v186_v20 }
  0x24   : > { %387 = vst.msk [vmem:[%s163_s12 + $0x10] sm:$0xff] %vm201_vm0, %v195_v25 }
  0x25   : > { %203 = vst.msk [vmem:[%s163_s12 + $0x8] sm:$0xff] %vm201_vm0, %v194_v26 }
  0x26   : > { %388 = vst.msk [vmem:[%s163_s12 + $0x18] sm:$0xff] %vm201_vm0, %v196_v27  ;;  %219 = sbr.rel (!%p601_p9) target bundleno = 51 (0x33), region = 32 }
  0x27   : > { %389 = vst.msk [vmem:[%s163_s12 + $0x20] sm:$0xff] %vm201_vm0, %v197_v28 }
  0x28   : > { %390 = vst.msk [vmem:[%s163_s12 + $0x28] sm:$0xff] %vm201_vm0, %v198_v29 }
  0x29   : > { %391 = vst.msk [vmem:[%s163_s12 + $0x30] sm:$0xff] %vm201_vm0, %v199_v30 }
  0x2a   : > { %392 = vst.msk [vmem:[%s163_s12 + $0x38] sm:$0xff] %vm201_vm0, %v200_v31  ;;  %v269_v32 = vld [vmem:[%s163_s12] sm:$0xff] (%p601_p9) }
  0x2b   : > { %v273_v34 = vld [vmem:[%s163_s12 + $0x10] sm:$0xff]  ;;  %270 = vst [vmem:[%s226_s17] sm:$0xff] %v269_v32 }
  0x2c   : > { %v271_v33 = vld [vmem:[%s163_s12 + $0x8] sm:$0xff]  ;;  %274 = vst [vmem:[%s226_s17 + $0x20] sm:$0xff] %v273_v34 }
  0x2d   : > { %v275_v35 = vld [vmem:[%s163_s12 + $0x18] sm:$0xff]  ;;  %272 = vst [vmem:[%s226_s17 + $0x8] sm:$0xff] %v271_v33 }
  0x2e   : > { %v277_v36 = vld [vmem:[%s163_s12 + $0x20] sm:$0xff]  ;;  %276 = vst [vmem:[%s226_s17 + $0x28] sm:$0xff] %v275_v35 }
  0x2f   : > { %v279_v37 = vld [vmem:[%s163_s12 + $0x28] sm:$0xff]  ;;  %278 = vst [vmem:[%s226_s17 + $0x40] sm:$0xff] %v277_v36 }
  0x30   : > { %v281_v38 = vld [vmem:[%s163_s12 + $0x30] sm:$0xff]  ;;  %280 = vst [vmem:[%s226_s17 + $0x48] sm:$0xff] %v279_v37 }
  0x31   : > { %v283_v39 = vld [vmem:[%s163_s12 + $0x38] sm:$0xff]  ;;  %282 = vst [vmem:[%s226_s17 + $0x60] sm:$0xff] %v281_v38 }
  0x32   : > { %284 = vst [vmem:[%s226_s17 + $0x68] sm:$0xff] %v283_v39 }
  0x33 PF: > { %s14_s11 = sadd.s32 1, %s537_s11   ;;  %s661_s6 = smov %s521_s7 }
  0x34   : > { %p11_p1 = scmp.ge.s32.totalorder %s14_s11, 4   ;;  %s662_s7 = smov %s525_s8 }
  0x35   : > { %s663_s8 = smov %s599_s18  ;;  %s664_s9 = smov %s533_s10 }
  0x36   : > { %s665_s10 = smov %s667_s13  ;;  %13 = sbr.rel (!%p11_p1) target bundleno = 4 (0x4), region = 108 }
  0x3b   :  { %300 = vsyncpa [#allocation3], 1 }
  0x3c   :  { %302 = vsyncpa [#allocation3 + $0x1], 1 }

</bundles_post_ra>
